<compile_context>
chip_gen: v7x
topology: tpu7x:2x2x1
jax: 0.10.0
libtpu: 0.0.40
codegen_flags: <defaults>
</compile_context>

<pallas_src>
import functools

import jax
import jax.numpy as jnp
from jax.experimental import pallas as pl
from jax.experimental.pallas import tpu as pltpu


def _round_up(x, m):
    return ((x + m - 1) // m) * m


def _largest_128_divisor(total, cap):
    """Largest multiple of 128 that divides `total` (a multiple of 128), <= cap."""
    t = max(128, min(total, (cap // 128) * 128))
    while total % t != 0:
        t -= 128
    return t


def _tile_sizes(M, K_pad, N_pad, w_itemsize):
    """VMEM-budget-derived tiling. Default (M=8, K=512, N_pad=256) -> grid (1,1,1)."""
    # N tile: lane-dense, capped so one weight tile stays small; must divide N_pad.
    tn = _largest_128_divisor(N_pad, 2048)
    # K tile: cap the (tk, tn) weight tile at ~4 MiB (double-buffered by the
    # pipeline -> ~8 MiB live), safe on v5e 16 MiB scoped / v7x 64 MiB phys.
    w_tile_budget = 4 * 1024 * 1024
    tk_cap = max(128, w_tile_budget // (tn * w_itemsize))
    tk = _largest_128_divisor(K_pad, tk_cap)
    # M tile: full batch dim for small M (block dim == full array dim -> no pad).
    if M <= 256:
        tm, M_pad = M, M
    else:
        tm = 256
        M_pad = _round_up(M, tm)
    return tm, M_pad, tk, tn


def prepare_params(weight, bias, weight_dtype=jnp.bfloat16):
    """One-time parameter preparation (outside the hot path).

    weight: [N, K] (PyTorch nn.Linear layout)  ->  [K_pad, N_pad] bf16 (MXU-native)
    bias:   [N]                                ->  [1, N_pad] f32
    """
    N, K = weight.shape
    K_pad = _round_up(K, 128)
    N_pad = _round_up(N, 128)
    w_t = (
        jnp.zeros((K_pad, N_pad), weight_dtype)
        .at[:K, :N]
        .set(weight.T.astype(weight_dtype))
    )
    b_p = jnp.zeros((1, N_pad), jnp.float32).at[0, :N].set(bias.astype(jnp.float32))
    return w_t, b_p


def _linear_kernel_single_k(x_ref, w_ref, b_ref, o_ref):
    # Fast path: whole K in one block -> no accumulator, no pl.when, one store.
    o_ref[...] = (
        jnp.dot(
            x_ref[...].astype(jnp.bfloat16),
            w_ref[...],
            preferred_element_type=jnp.float32,
        )
        + b_ref[...]
    ).astype(o_ref.dtype)


def _linear_kernel_multi_k(x_ref, w_ref, b_ref, o_ref):
    # Output block index is constant along the K axis -> o_ref (f32) is resident;
    # accumulate directly into it and add bias on the last K step.
    k = pl.program_id(2)

    @pl.when(k == 0)
    def _():
        o_ref[...] = jnp.zeros_like(o_ref)

    o_ref[...] += jnp.dot(
        x_ref[...].astype(jnp.bfloat16),
        w_ref[...],
        preferred_element_type=jnp.float32,
    )

    @pl.when(k == pl.num_programs(2) - 1)
    def _():
        o_ref[...] += b_ref[...]


@functools.partial(jax.jit, static_argnames=("n_output",))
def classifier_forward(x, w_t, b_p, n_output):
    """Equivalent of Classifier.forward: x @ weight.T + bias.

    x:   [M, K]          float32
    w_t: [K_pad, N_pad]  pre-transposed, pre-padded bf16 weight (prepare_params)
    b_p: [1, N_pad]      pre-padded f32 bias
    returns [M, n_output] float32
    """
    M, K = x.shape
    K_pad, N_pad = w_t.shape
    tm, M_pad, tk, tn = _tile_sizes(M, K_pad, N_pad, jnp.dtype(w_t.dtype).itemsize)

    # Pad activations only when actually required (default shape: no pad op).
    if (M_pad, K_pad) != (M, K):
        x_p = jnp.zeros((M_pad, K_pad), x.dtype).at[:M, :K].set(x)
    else:
        x_p = x

    grid = (M_pad // tm, N_pad // tn, K_pad // tk)
    kernel = _linear_kernel_single_k if grid[2] == 1 else _linear_kernel_multi_k

    out = pl.pallas_call(
        kernel,
        out_shape=jax.ShapeDtypeStruct((M_pad, N_pad), jnp.float32),
        grid=grid,
        in_specs=[
            pl.BlockSpec((tm, tk), lambda i, j, k: (i, k)),   # x  [M, K]
            pl.BlockSpec((tk, tn), lambda i, j, k: (k, j)),   # W^T [K, N]
            pl.BlockSpec((1, tn), lambda i, j, k: (0, j)),    # bias [1, N]
        ],
        out_specs=pl.BlockSpec((tm, tn), lambda i, j, k: (i, j)),
        compiler_params=pltpu.CompilerParams(
            dimension_semantics=("parallel", "parallel", "arbitrary"),
            vmem_limit_bytes=32 * 1024 * 1024,
        ),
    )(x_p, w_t, b_p)

    # Consumers that can work on a lane-dense buffer may take `out` directly;
    # slicing here keeps the torch-shaped contract.
    return out[:M, :n_output]


if __name__ == "__main__":
    # Module defaults: n_feature=512, n_output=250. Small batch.
    n_feature, n_output = 512, 250
    batch = 8

    key = jax.random.PRNGKey(0)
    kx, kw, kb = jax.random.split(key, 3)

    x = jax.random.normal(kx, (batch, n_feature), dtype=jnp.float32)
    bound = 1.0 / (n_feature ** 0.5)
    weight = jax.random.uniform(
        kw, (n_output, n_feature), minval=-bound, maxval=bound, dtype=jnp.float32
    )
    bias = jax.random.uniform(
        kb, (n_output,), minval=-bound, maxval=bound, dtype=jnp.float32
    )

    # One-time parameter prep (pad + transpose + bf16 cast, outside the hot path).
    w_t, b_p = prepare_params(weight, bias)
    jax.block_until_ready((w_t, b_p))

    y = classifier_forward(x, w_t, b_p, n_output)
    jax.block_until_ready(y)

    assert y.shape == (batch, n_output)

    # Tight check vs. a reference using the same bf16 weights / bf16 activations
    # with f32 accumulation (isolates kernel correctness from quantization).
    w_deq = w_t[:n_feature, :n_output]  # bf16 [K, N]
    y_ref_q = (
        jnp.dot(x.astype(jnp.bfloat16), w_deq, preferred_element_type=jnp.float32)
        + bias
    )
    assert jnp.allclose(y, y_ref_q, atol=1e-4, rtol=1e-4)

    # Loose check vs. the full-f32 PyTorch-equivalent reference (bf16 rounding
    # of weights/activations bounds the difference).
    y_ref_f32 = x @ weight.T + bias
    assert jnp.allclose(y, y_ref_f32, atol=3e-2, rtol=3e-2)

    print("KERNEL_OK")
</pallas_src>

<mosaic_0001>
module attributes {stable_mosaic.version = 11 : i64} {
  func.func @_linear_kernel_single_k(%arg0: i32, %arg1: i32, %arg2: i32, %arg3: memref<8x512xf32, #tpu.memory_space<vmem>>, %arg4: memref<512x256xbf16, #tpu.memory_space<vmem>>, %arg5: memref<1x256xf32, #tpu.memory_space<vmem>>, %arg6: memref<8x256xf32, #tpu.memory_space<vmem>>) attributes {dimension_semantics = [#tpu.dimension_semantics<parallel>, #tpu.dimension_semantics<parallel>, #tpu.dimension_semantics<arbitrary>], iteration_bounds = array<i64: 1, 1, 1>, scalar_prefetch = 0 : i64, scratch_operands = 0 : i64, tpu.core_type = #tpu.core_type<tc>, window_params = [{transform_indices = @transform_0, window_bounds = array<i64: 8, 512>}, {transform_indices = @transform_1, window_bounds = array<i64: 512, 256>}, {transform_indices = @transform_2, window_bounds = array<i64: 1, 256>}, {transform_indices = @transform_3, window_bounds = array<i64: 8, 256>}]} {
    %c0 = arith.constant 0 : index
    %c0_0 = arith.constant 0 : index
    %0 = vector.load %arg3[%c0, %c0_0] : memref<8x512xf32, #tpu.memory_space<vmem>>, vector<8x512xf32>
    %1 = arith.truncf %0 : vector<8x512xf32> to vector<8x512xbf16>
    %c0_1 = arith.constant 0 : index
    %c0_2 = arith.constant 0 : index
    %2 = vector.load %arg4[%c0_1, %c0_2] : memref<512x256xbf16, #tpu.memory_space<vmem>>, vector<512x256xbf16>
    %cst = arith.constant dense<0.000000e+00> : vector<8x256xf32>
    %3 = tpu.matmul %1, %2, %cst {dimension_numbers = #tpu.dot_dimension_numbers<[1], [0], [0], [1], [0, 0, 1, 1], [], []>} : vector<8x512xbf16>, vector<512x256xbf16>, vector<8x256xf32> -> vector<8x256xf32>
    %c0_3 = arith.constant 0 : index
    %c0_4 = arith.constant 0 : index
    %4 = vector.load %arg5[%c0_3, %c0_4] : memref<1x256xf32, #tpu.memory_space<vmem>>, vector<1x256xf32>
    %5 = vector.broadcast %4 : vector<1x256xf32> to vector<8x256xf32>
    %6 = arith.addf %3, %5 : vector<8x256xf32>
    %c0_5 = arith.constant 0 : index
    %c0_6 = arith.constant 0 : index
    %7 = vector.load %arg6[%c0_5, %c0_6] : memref<8x256xf32, #tpu.memory_space<vmem>>, vector<8x256xf32>
    tpu.vector_store %arg6[%c0_5, %c0_6], %6 {strides = array<i32>} : memref<8x256xf32, #tpu.memory_space<vmem>>, vector<8x256xf32>,
    return
  }
  func.func @transform_0(%arg0: i32, %arg1: i32, %arg2: i32) -> (i32, i32) {
    %c0_i32 = arith.constant 0 : i32
    return %arg0, %arg2 : i32, i32
  }
  func.func @transform_1(%arg0: i32, %arg1: i32, %arg2: i32) -> (i32, i32) {
    %c0_i32 = arith.constant 0 : i32
    return %arg2, %arg1 : i32, i32
  }
  func.func @transform_2(%arg0: i32, %arg1: i32, %arg2: i32) -> (i32, i32) {
    %c0_i32 = arith.constant 0 : i32
    %c0_i32_0 = arith.constant 0 : i32
    return %c0_i32, %arg1 : i32, i32
  }
  func.func @transform_3(%arg0: i32, %arg1: i32, %arg2: i32) -> (i32, i32) {
    %c0_i32 = arith.constant 0 : i32
    return %arg0, %arg1 : i32, i32
  }
}

</mosaic_0001>

<bundles_post_ra>
// kernel: classifier_forward.1
= control target key start
LH: loop header
LB: loop body
LE: loop exit
PB: predicated region body
PF: predicated region fallthrough
CT: control target
= control target key end

     0   :  { %8 = vsyncpa [#allocation3], 0  ;;  %s857_s0 = inlined_call_operand.hbm [shape: f32[8,512], index: 0, kind: input, shape index: {}]   ;;  %s858_s1 = inlined_call_operand.hbm [shape: bf16[512,256], index: 1, kind: input, shape index: {}]   ;;  %s859_s2 = inlined_call_operand.vmem [shape: f32[1,256], index: 2, kind: input, shape index: {}]   ;;  %s860_s3 = inlined_call_operand.hbm [shape: f32[8,256], index: 3, kind: output, shape index: {}]  }
   0x1   :  { %9 = vsyncpa [#allocation6], 0 }
   0x2   :  { %10 = vsyncpa [#allocation4], 0  ;;  %s786_s12 = smov [#allocation2]   ;;  %s787_s14 = smov [#allocation5]  }
   0x3   :  { %s17_s13 = sshll.u32 %s786_s12, 4  ;;  %s26_s15 = sshll.u32 %s787_s14, 4  ;;  %s18_s13 = int_to_ptr.vmem [resolvable:$true] %s17_s13  ;;  %s811_s15 = int_to_ptr.vmem [resolvable:$true] %s26_s15 }
   0x4   :  { %s714_s18 = scalar_lea.hbm %s857_s0, 512 }
   0x5   :  { %p715_p0 = scmp.ne.s32.totalorder %s857_s0, %s714_s18  ;;  %p718_p1 = scmp.lt.u32.totalorder %s714_s18, %s857_s0 }
   0x7   :  { %p720_p2 = pnand %p718_p1, %p715_p0 }
   0x9   :  { %723 = shalt.err (!%p720_p2)
}
   0xa   :  { %s724_s23 = scalar_lea.vmem %s18_s13, 512  ;;  %p729_p4 = scmp.lt.s32.totalorder %s18_s13, %s18_s13 }
   0xb   :  { %p725_p3 = scmp.ne.s32.totalorder %s18_s13, %s724_s23  ;;  %p730_p5 = scmp.lt.s32.totalorder %s724_s23, %s724_s23 }
   0xd   :  { %p731_p6 = por %p730_p5, %p729_p4 }
   0xf   :  { %p732_p7 = pnand %p731_p6, %p725_p3 }
  0x11   :  { %735 = shalt.err (!%p732_p7)
}
  0x12   :  { %20 = dma.hbm_to_vmem [thread:$0]  %s857_s0, 512, %s18_s13, [#allocation3]  }
  0x13   :  { %s736_s28 = scalar_lea.hbm %s858_s1, 8192 }
  0x14   :  { %p737_p8 = scmp.ne.s32.totalorder %s858_s1, %s736_s28  ;;  %p740_p9 = scmp.lt.u32.totalorder %s736_s28, %s858_s1 }
  0x16   :  { %p742_p10 = pnand %p740_p9, %p737_p8 }
  0x18   :  { %745 = shalt.err (!%p742_p10)
}
  0x19   :  { %s746_s6 = scalar_lea.vmem %s811_s15, 8192  ;;  %p751_p12 = scmp.lt.s32.totalorder %s811_s15, %s811_s15 }
  0x1a   :  { %p747_p11 = scmp.ne.s32.totalorder %s811_s15, %s746_s6  ;;  %p752_p13 = scmp.lt.s32.totalorder %s746_s6, %s746_s6 }
  0x1c   :  { %p753_p0 = por %p752_p13, %p751_p12 }
  0x1e   :  { %p754_p1 = pnand %p753_p0, %p747_p11 }
  0x20   :  { %757 = shalt.err (!%p754_p1)
}
  0x21   :  { %s788_s0 = smov 128   ;;  %s789_s7 = smov 8  }
  0x22   :  { %32 = dma.hbm_to_vmem [thread:$0]  %s858_s1, 8192, %s811_s15, [#allocation6], %s788_s0, %s788_s0, %s789_s7  }
  0x23   :  { %780 = dma.done.wait [#allocation3], 512  }
  0x24   :  { %781 = vsyncadd [#allocation3], 4294966784 }
  0x25   :  { %782 = dma.done.wait [#allocation6], 8192  }
  0x26   :  { %783 = vsyncadd [#allocation6], 4294959104  ;;  %v618_v0 = vld [vmem:[#allocation5 + $0x4] ss:$8 sps:$4 sm:$0xff]   ;;  %v622_v2 = vld [vmem:[#allocation5] ss:$8 sps:$4 sm:$0xff]  }
  0x27   :  { %v620_v1 = vld [vmem:[#allocation5 + $0x104] ss:$8 sps:$4 sm:$0xff]   ;;  %445 = vmatprep.subr.bf16.mxu1 %v618_v0  ;;  %v623_v3 = vld [vmem:[#allocation5 + $0x100] ss:$8 sps:$4 sm:$0xff]   ;;  %v624_v4 = vld [vmem:[#allocation5 + $0x14] ss:$8 sps:$4 sm:$0xff]  }
  0x28   :  { %486 = vmatprep.subr.bf16.mxu0 %v620_v1  ;;  %446 = vmatpush1.bf16.msra.mxu1 %v622_v2  ;;  %v626_v5 = vld [vmem:[#allocation5 + $0x114] ss:$8 sps:$4 sm:$0xff]   ;;  %v628_v6 = vld [vmem:[#allocation5 + $0x10] ss:$8 sps:$4 sm:$0xff]   ;;  %v630_v8 = vld [vmem:[#allocation5 + $0x24] ss:$8 sps:$4 sm:$0xff]  }
  0x29   :  { %487 = vmatpush1.bf16.msra.mxu0 %v623_v3  ;;  %447 = vmatprep.subr.bf16.mxu1 %v624_v4  ;;  %v629_v7 = vld [vmem:[#allocation5 + $0x110] ss:$8 sps:$4 sm:$0xff]   ;;  %v632_v9 = vld [vmem:[#allocation5 + $0x124] ss:$8 sps:$4 sm:$0xff]   ;;  %v634_v10 = vld [vmem:[#allocation5 + $0x20] ss:$8 sps:$4 sm:$0xff]  }
  0x2a   :  { %488 = vmatprep.subr.bf16.mxu0 %v626_v5  ;;  %v635_v11 = vld [vmem:[#allocation5 + $0x120] ss:$8 sps:$4 sm:$0xff]   ;;  %v636_v12 = vld [vmem:[#allocation5 + $0x34] ss:$8 sps:$4 sm:$0xff]   ;;  %v640_v14 = vld [vmem:[#allocation5 + $0x30] ss:$8 sps:$4 sm:$0xff]  }
  0x2b   :  { %v638_v13 = vld [vmem:[#allocation5 + $0x134] ss:$8 sps:$4 sm:$0xff]   ;;  %v641_v15 = vld [vmem:[#allocation5 + $0x130] ss:$8 sps:$4 sm:$0xff]   ;;  %v642_v16 = vld [vmem:[#allocation5 + $0x44] ss:$8 sps:$4 sm:$0xff]  }
  0x2c   :  { %448 = vmatpush1.bf16.msra.mxu1 %v628_v6  ;;  %v644_v17 = vld [vmem:[#allocation5 + $0x144] ss:$8 sps:$4 sm:$0xff]   ;;  %v646_v18 = vld [vmem:[#allocation5 + $0x40] ss:$8 sps:$4 sm:$0xff]   ;;  %v648_v20 = vld [vmem:[#allocation5 + $0x54] ss:$8 sps:$4 sm:$0xff]  }
  0x2d   :  { %489 = vmatpush1.bf16.msra.mxu0 %v629_v7  ;;  %449 = vmatprep.subr.bf16.mxu1 %v630_v8  ;;  %v647_v19 = vld [vmem:[#allocation5 + $0x140] ss:$8 sps:$4 sm:$0xff]   ;;  %v650_v21 = vld [vmem:[#allocation5 + $0x154] ss:$8 sps:$4 sm:$0xff]   ;;  %v652_v22 = vld [vmem:[#allocation5 + $0x50] ss:$8 sps:$4 sm:$0xff]   ;;  %v115_v8 = vlaneseq }
  0x2e   :  { %490 = vmatprep.subr.bf16.mxu0 %v632_v9  ;;  %v653_v23 = vld [vmem:[#allocation5 + $0x150] ss:$8 sps:$4 sm:$0xff]   ;;  %v654_v24 = vld [vmem:[#allocation5 + $0x64] ss:$8 sps:$4 sm:$0xff]   ;;  %v658_v26 = vld [vmem:[#allocation5 + $0x60] ss:$8 sps:$4 sm:$0xff]  }
  0x2f   :  { %v656_v25 = vld [vmem:[#allocation5 + $0x164] ss:$8 sps:$4 sm:$0xff]   ;;  %v659_v27 = vld [vmem:[#allocation5 + $0x160] ss:$8 sps:$4 sm:$0xff]   ;;  %v660_v28 = vld [vmem:[#allocation5 + $0x74] ss:$8 sps:$4 sm:$0xff]  }
  0x30   :  { %450 = vmatpush1.bf16.msra.mxu1 %v634_v10  ;;  %v662_v29 = vld [vmem:[#allocation5 + $0x174] ss:$8 sps:$4 sm:$0xff]   ;;  %v664_v30 = vld [vmem:[#allocation5 + $0x70] ss:$8 sps:$4 sm:$0xff]   ;;  %v666_v32 = vld [vmem:[#allocation5 + $0x84] ss:$8 sps:$4 sm:$0xff]  }
  0x31   :  { %491 = vmatpush1.bf16.msra.mxu0 %v635_v11  ;;  %451 = vmatprep.subr.bf16.mxu1 %v636_v12  ;;  %v665_v31 = vld [vmem:[#allocation5 + $0x170] ss:$8 sps:$4 sm:$0xff]   ;;  %v668_v33 = vld [vmem:[#allocation5 + $0x184] ss:$8 sps:$4 sm:$0xff]   ;;  %v670_v34 = vld [vmem:[#allocation5 + $0x80] ss:$8 sps:$4 sm:$0xff]  }
  0x32   :  { %492 = vmatprep.subr.bf16.mxu0 %v638_v13  ;;  %v671_v35 = vld [vmem:[#allocation5 + $0x180] ss:$8 sps:$4 sm:$0xff]   ;;  %v672_v36 = vld [vmem:[#allocation5 + $0x94] ss:$8 sps:$4 sm:$0xff]   ;;  %v676_v38 = vld [vmem:[#allocation5 + $0x90] ss:$8 sps:$4 sm:$0xff]  }
  0x33   :  { %v674_v37 = vld [vmem:[#allocation5 + $0x194] ss:$8 sps:$4 sm:$0xff]   ;;  %v677_v39 = vld [vmem:[#allocation5 + $0x190] ss:$8 sps:$4 sm:$0xff]   ;;  %v678_v40 = vld [vmem:[#allocation5 + $0xa4] ss:$8 sps:$4 sm:$0xff]  }
  0x34   :  { %452 = vmatpush1.bf16.msra.mxu1 %v640_v14  ;;  %v680_v41 = vld [vmem:[#allocation5 + $0x1a4] ss:$8 sps:$4 sm:$0xff]   ;;  %v682_v42 = vld [vmem:[#allocation5 + $0xa0] ss:$8 sps:$4 sm:$0xff]   ;;  %v684_v44 = vld [vmem:[#allocation5 + $0xb4] ss:$8 sps:$4 sm:$0xff]  }
  0x35   :  { %493 = vmatpush1.bf16.msra.mxu0 %v641_v15  ;;  %453 = vmatprep.subr.bf16.mxu1 %v642_v16  ;;  %v683_v43 = vld [vmem:[#allocation5 + $0x1a0] ss:$8 sps:$4 sm:$0xff]   ;;  %v686_v45 = vld [vmem:[#allocation5 + $0x1b4] ss:$8 sps:$4 sm:$0xff]   ;;  %v688_v49 = vld [vmem:[#allocation5 + $0xb0] ss:$8 sps:$4 sm:$0xff]  }
  0x36   :  { %494 = vmatprep.subr.bf16.mxu0 %v644_v17  ;;  %v42_v46 = vld [vmem:[#allocation2 + $0x8] sm:$0xff]  ;;  %v44_v48 = vld [vmem:[#allocation2 + $0x18] sm:$0xff]  ;;  %v41_v4 = vld [vmem:[#allocation2] sm:$0xff]  ;;  %v116_v9 = vshrl.u32 %v115_v8, 7  ;;  %s790_s11 = smov [#allocation7]  }
  0x37   :  { %v46_v47 = vpack.c.bf16 %v42_v46, %v42_v46  ;;  %v689_v50 = vld [vmem:[#allocation5 + $0x1b0] ss:$8 sps:$4 sm:$0xff]   ;;  %v48_v51 = vpack.c.bf16 %v44_v48, %v44_v48  ;;  %v690_v52 = vld [vmem:[#allocation5 + $0xc4] ss:$8 sps:$4 sm:$0xff]   ;;  %v694_v54 = vld [vmem:[#allocation5 + $0xc0] ss:$8 sps:$4 sm:$0xff]   ;;  %v45_v6 = vpack.c.bf16 %v41_v4, %v41_v4 }
  0x38   :  { %454 = vmatpush1.bf16.msra.mxu1 %v646_v18  ;;  %v692_v53 = vld [vmem:[#allocation5 + $0x1c4] ss:$8 sps:$4 sm:$0xff]   ;;  %v695_v55 = vld [vmem:[#allocation5 + $0x1c0] ss:$8 sps:$4 sm:$0xff]   ;;  %v696_v56 = vld [vmem:[#allocation5 + $0xd4] ss:$8 sps:$4 sm:$0xff]  }
  0x39   :  { %495 = vmatpush1.bf16.msra.mxu0 %v647_v19  ;;  %455 = vmatprep.subr.bf16.mxu1 %v648_v20  ;;  %v698_v57 = vld [vmem:[#allocation5 + $0x1d4] ss:$8 sps:$4 sm:$0xff]   ;;  %v700_v58 = vld [vmem:[#allocation5 + $0xd0] ss:$8 sps:$4 sm:$0xff]   ;;  %v702_v60 = vld [vmem:[#allocation5 + $0xe4] ss:$8 sps:$4 sm:$0xff]  }
  0x3a   :  { %496 = vmatprep.subr.bf16.mxu0 %v650_v21  ;;  %477 = vmatprep.mubr.bf16.mxu1 %v46_v47  ;;  %v701_v59 = vld [vmem:[#allocation5 + $0x1d0] ss:$8 sps:$4 sm:$0xff]   ;;  %v704_v61 = vld [vmem:[#allocation5 + $0x1e4] ss:$8 sps:$4 sm:$0xff]   ;;  %v706_v62 = vld [vmem:[#allocation5 + $0xe0] ss:$8 sps:$4 sm:$0xff]  }
  0x3b   :  { %518 = vmatprep.mubr.bf16.mxu0 %v48_v51  ;;  %v707_v63 = vld [vmem:[#allocation5 + $0x1e0] ss:$8 sps:$4 sm:$0xff]   ;;  %v708_v0 = vld [vmem:[#allocation5 + $0xf4] ss:$8 sps:$4 sm:$0xff]   ;;  %v712_v2 = vld [vmem:[#allocation5 + $0xf0] ss:$8 sps:$4 sm:$0xff]  }
  0x3c   :  { %456 = vmatpush1.bf16.msra.mxu1 %v652_v22  ;;  %v710_v1 = vld [vmem:[#allocation5 + $0x1f4] ss:$8 sps:$4 sm:$0xff]   ;;  %v713_v3 = vld [vmem:[#allocation5 + $0x1f0] ss:$8 sps:$4 sm:$0xff]   ;;  %v117_v10 = vsub.s32 0, %v116_v9  ;;  %v121_v12 = vsub.s32 1, %v116_v9 }
  0x3d   :  { %497 = vmatpush1.bf16.msra.mxu0 %v653_v23  ;;  %457 = vmatprep.subr.bf16.mxu1 %v654_v24  ;;  %v43_v5 = vld [vmem:[#allocation2 + $0x10] sm:$0xff]  ;;  %v113_v11 = vld [vmem:[%s859_s2] sm:$0x3]  ;;  %s535_s12 = sshll.u32 %s790_s11, 4  ;;  %s536_s12 = int_to_ptr.vmem [resolvable:$true] %s535_s12 }
  0x3e   :  { %498 = vmatprep.subr.bf16.mxu0 %v656_v25  ;;  %v47_v7 = vpack.c.bf16 %v43_v5, %v43_v5  ;;  %v118_v13 = vrot.slane %v113_v11, %v117_v10  ;;  %v122_v14 = vrot.slane %v113_v11, %v121_v12  ;;  %s758_s2 = scalar_lea.vmem %s536_s12, 256  ;;  %p763_p3 = scmp.lt.s32.totalorder %s536_s12, %s536_s12 }
  0x3f   :  { %p759_p2 = scmp.ne.s32.totalorder %s536_s12, %s758_s2  ;;  %p764_p4 = scmp.lt.s32.totalorder %s758_s2, %s758_s2 }
  0x40   :  { %458 = vmatpush1.bf16.msra.mxu1 %v658_v26 }
  0x41   :  { %499 = vmatpush1.bf16.msra.mxu0 %v659_v27  ;;  %459 = vmatprep.subr.bf16.mxu1 %v660_v28  ;;  %p765_p5 = por %p764_p4, %p763_p3 }
  0x42   :  { %500 = vmatprep.subr.bf16.mxu0 %v662_v29 }
  0x43   :  { %p766_p6 = pnand %p765_p5, %p759_p2 }
  0x44   :  { %460 = vmatpush1.bf16.msra.mxu1 %v664_v30 }
  0x45   :  { %501 = vmatpush1.bf16.msra.mxu0 %v665_v31  ;;  %461 = vmatprep.subr.bf16.mxu1 %v666_v32 }
  0x46   :  { %502 = vmatprep.subr.bf16.mxu0 %v668_v33 }
  0x48   :  { %462 = vmatpush1.bf16.msra.mxu1 %v670_v34 }
  0x49   :  { %503 = vmatpush1.bf16.msra.mxu0 %v671_v35  ;;  %463 = vmatprep.subr.bf16.mxu1 %v672_v36 }
  0x4a   :  { %504 = vmatprep.subr.bf16.mxu0 %v674_v37 }
  0x4c   :  { %464 = vmatpush1.bf16.msra.mxu1 %v676_v38 }
  0x4d   :  { %505 = vmatpush1.bf16.msra.mxu0 %v677_v39  ;;  %465 = vmatprep.subr.bf16.mxu1 %v678_v40 }
  0x4e   :  { %506 = vmatprep.subr.bf16.mxu0 %v680_v41 }
  0x50   :  { %466 = vmatpush1.bf16.msra.mxu1 %v682_v42 }
  0x51   :  { %507 = vmatpush1.bf16.msra.mxu0 %v683_v43  ;;  %467 = vmatprep.subr.bf16.mxu1 %v684_v44 }
  0x52   :  { %508 = vmatprep.subr.bf16.mxu0 %v686_v45 }
  0x54   :  { %468 = vmatpush1.bf16.msra.mxu1 %v688_v49 }
  0x55   :  { %509 = vmatpush1.bf16.msra.mxu0 %v689_v50  ;;  %469 = vmatprep.subr.bf16.mxu1 %v690_v52 }
  0x56   :  { %510 = vmatprep.subr.bf16.mxu0 %v692_v53 }
  0x58   :  { %470 = vmatpush1.bf16.msra.mxu1 %v694_v54 }
  0x59   :  { %511 = vmatpush1.bf16.msra.mxu0 %v695_v55  ;;  %471 = vmatprep.subr.bf16.mxu1 %v696_v56 }
  0x5a   :  { %512 = vmatprep.subr.bf16.mxu0 %v698_v57 }
  0x5c   :  { %472 = vmatpush1.bf16.msra.mxu1 %v700_v58 }
  0x5d   :  { %513 = vmatpush1.bf16.msra.mxu0 %v701_v59  ;;  %473 = vmatprep.subr.bf16.mxu1 %v702_v60 }
  0x5e   :  { %514 = vmatprep.subr.bf16.mxu0 %v704_v61 }
  0x60   :  { %474 = vmatpush1.bf16.msra.mxu1 %v706_v62 }
  0x61   :  { %515 = vmatpush1.bf16.msra.mxu0 %v707_v63  ;;  %475 = vmatprep.subr.bf16.mxu1 %v708_v0 }
  0x62   :  { %516 = vmatprep.subr.bf16.mxu0 %v710_v1 }
  0x64   :  { %476 = vmatpush1.bf16.msra.mxu1 %v712_v2 }
  0x65   :  { %517 = vmatpush1.bf16.msra.mxu0 %v713_v3 }
  0x67   :  { %478 = vmatmul.mubr.bf16.vlgmr.msra.gmra.mrb[0].mxu1 %v45_v6 }
  0x68   :  { %519 = vmatmul.mubr.bf16.vlgmr.msra.gmra.mrb[0].mxu0 %v47_v7 }
 0x13a   :  { %v479_v15 = vpop.f32.mrb[0].mxu1 }
 0x13b   :  { %v520_v16 = vpop.f32.mrb[0].mxu0  ;;  %v480_v17 = vadd.f32 %v479_v15, %v118_v13  ;;  %v481_v18 = vpop.f32.mrb[1].mxu1 }
 0x13c   :  { %v522_v19 = vpop.f32.mrb[1].mxu0  ;;  %v482_v20 = vadd.f32 %v481_v18, %v122_v14  ;;  %v483_v21 = vpop.f32.mrb[2].mxu1 }
 0x13d   :  { %v524_v22 = vpop.f32.mrb[2].mxu0  ;;  %v521_v23 = vadd.f32 %v520_v16, %v480_v17  ;;  %v484_v24 = vpop.f32.mrb[3].mxu1 }
 0x13e   :  { %v525_v25 = vpop.f32.mrb[3].mxu0  ;;  %v523_v26 = vadd.f32 %v522_v19, %v482_v20 }
 0x13f   :  { %527 = vst [vmem:[#allocation7] sm:$0xff] %v521_v23 }
 0x140   :  { %528 = vst [vmem:[#allocation7 + $0x8] sm:$0xff] %v523_v26 }
 0x141   :  { %769 = shalt.err (!%p766_p6)
}
 0x142   :  { %s770_s15 = scalar_lea.hbm %s860_s3, 256 }
 0x143   :  { %p771_p7 = scmp.ne.s32.totalorder %s860_s3, %s770_s15  ;;  %p774_p8 = scmp.lt.u32.totalorder %s770_s15, %s860_s3 }
 0x145   :  { %p776_p9 = pnand %p774_p8, %p771_p7 }
 0x147   :  { %779 = shalt.err (!%p776_p9)
}
 0x148   :  { %538 = dma.vmem_to_hbm [thread:$0]  %s536_s12, 256, %s860_s3, [#allocation4]  }
 0x149   :  { %784 = dma.done.wait [#allocation4], 256  }
 0x14a   :  { %785 = vsyncadd [#allocation4], 4294967040 }
 0x14b   :  { %542 = vsyncpa [#allocation3], 1 }
 0x14c   :  { %543 = vsyncpa [#allocation6], 1 }
 0x14d   :  { %544 = vsyncpa [#allocation4], 1 }

</bundles_post_ra>
